<compile_context>
chip_gen: v5e
topology: v5e:2x2
jax: 0.10.0
libtpu: 0.0.40
codegen_flags: <defaults>
</compile_context>

<pallas_src>
import functools

import jax
import jax.numpy as jnp
from jax.experimental import pallas as pl
from jax.experimental.pallas import tpu as pltpu

# Per-grid-step sizing targets (bytes).  ~4 MiB of HBM traffic per step
# amortizes the ~0.35 us fixed step cost on every generation (worth ~1.1 MB
# of bandwidth on v7x's 3.2 TB/s HBM); the VMEM cap keeps the double-buffered
# in/out blocks plus f32 intermediates well under the scoped limit requested
# below.
_TARGET_STEP_HBM_BYTES = 4 << 20
_TILE_VMEM_BUDGET = 20 << 20
_VMEM_LIMIT_BYTES = 40 << 20


def _cdiv(a, b):
    return -(-a // b)


def _make_weightnet_kernel(n_layers):
    """Fused n-layer 1x1-conv MLP (+ReLU) on one (nB, C, rows) tile.

    Each contraction is unrolled channel-by-channel as VPU broadcast-FMAs:
        acc[b, o, r] += w[k, o] * h[b, k, r]
    which keeps this memory-bound kernel off the (heavily padded) MXU.
    """

    def kernel(*refs):
        x_ref, o_ref = refs[0], refs[-1]
        wb_refs = refs[1:-1]

        h = x_ref[...].astype(jnp.float32)            # (nB, C_in, rows)
        for li in range(n_layers):
            w_ref = wb_refs[2 * li]                   # (C_prev, C_next, 1) f32
            b_ref = wb_refs[2 * li + 1]               # (C_next, 1)         f32
            c_prev = w_ref.shape[0]
            acc = None
            for k in range(c_prev):                   # K <= 8: static unroll
                # (nB, 1, rows) * (1, C_next, 1) -> (nB, C_next, rows)
                term = h[:, k:k + 1, :] * w_ref[k][None]
                acc = term if acc is None else acc + term
            h = jnp.maximum(acc + b_ref[...][None], 0.0)   # bias + ReLU (f32)
        o_ref[...] = h.astype(o_ref.dtype)

    return kernel


def _choose_tiling(batch, hw, widths, in_itemsize, out_itemsize):
    """Pick (batches_per_block, rows_per_block) targeting ~4 MiB HBM traffic
    per grid step, within the per-tile VMEM budget."""
    c_in, c_out = widths[0], widths[-1]
    hbm_per_px = c_in * in_itemsize + c_out * out_itemsize
    # double-buffered in/out blocks + generous allowance for f32 intermediates
    vmem_per_px = (2 * c_in * in_itemsize + 2 * c_out * out_itemsize
                   + 4 * (widths[0] + 2 * max(widths)))
    px = max(128, _TARGET_STEP_HBM_BYTES // hbm_per_px)
    px = min(px, max(128, _TILE_VMEM_BUDGET // vmem_per_px))

    if hw >= px:
        # Large images: one image per block, rows tiled in multiples of 128;
        # cdiv grid + masking handles a ragged last block.
        rows = max(128, (px // 128) * 128)
        return 1, min(rows, hw)

    # Small images: full row extent per image, span several images per block.
    n_b = min(batch, max(1, px // hw))
    if batch >= 2 and _cdiv(batch, n_b) < 2:
        n_b = _cdiv(batch, 2)     # keep >= 2 parallel steps for v7x megacore
    return n_b, hw


@functools.partial(jax.jit, static_argnames=("out_dtype",))
def weightnet_forward(x_nchw, params, *, out_dtype=None):
    """WeightNet forward. x_nchw: [B, C_in, H, W] -> [B, C_out, H, W]."""
    batch, c_in, height, width = x_nchw.shape
    hw = height * width
    c_out = params[-1][0].shape[0]
    widths = [c_in] + [w.shape[0] for (w, _) in params]
    out_dtype = x_nchw.dtype if out_dtype is None else jnp.dtype(out_dtype)

    # NCHW -> (B, C_in, H*W): pure reshape, zero data movement.
    x3 = x_nchw.reshape(batch, c_in, hw)

    # Conv2d 1x1 weights (Co, Ci, 1, 1) -> (Ci, Co, 1); bias -> (Co, 1).
    # Cast to f32 once here (not per grid step inside the kernel).
    flat_params = []
    for w, b in params:
        flat_params.append(
            jnp.transpose(w[:, :, 0, 0]).astype(jnp.float32)[:, :, None])
        flat_params.append(b.astype(jnp.float32).reshape(-1, 1))

    n_b, rows = _choose_tiling(batch, hw, widths,
                               x_nchw.dtype.itemsize,
                               jnp.dtype(out_dtype).itemsize)
    grid = (_cdiv(batch, n_b), _cdiv(hw, rows))

    def const_spec(arr):
        # Tiny resident weight/bias constants: same (zero) block every step.
        # (pipeline_mode=pl.Buffered(1) would skip double-buffering them, but
        #  at <3 KiB total the win is negligible, so we keep the default.)
        nd = arr.ndim
        return pl.BlockSpec(arr.shape, lambda bi, ri, _nd=nd: (0,) * _nd)

    flops = 2 * batch * hw * sum(widths[i] * widths[i + 1]
                                 for i in range(len(widths) - 1))
    bytes_accessed = (x3.size * x3.dtype.itemsize
                      + batch * c_out * hw * jnp.dtype(out_dtype).itemsize
                      + sum(p.size * p.dtype.itemsize for p in flat_params))

    out3 = pl.pallas_call(
        _make_weightnet_kernel(len(params)),
        out_shape=jax.ShapeDtypeStruct((batch, c_out, hw), out_dtype),
        grid_spec=pltpu.PrefetchScalarGridSpec(
            num_scalar_prefetch=0,
            grid=grid,
            in_specs=[
                pl.BlockSpec((n_b, c_in, rows), lambda bi, ri: (bi, 0, ri)),
            ] + [const_spec(p) for p in flat_params],
            out_specs=pl.BlockSpec((n_b, c_out, rows),
                                   lambda bi, ri: (bi, 0, ri)),
        ),
        compiler_params=pltpu.CompilerParams(
            dimension_semantics=("parallel", "parallel"),
            vmem_limit_bytes=_VMEM_LIMIT_BYTES),
        cost_estimate=pl.CostEstimate(flops=flops, transcendentals=0,
                                      bytes_accessed=bytes_accessed),
    )(x3, *flat_params)

    # (B, C_out, H*W) -> NCHW: pure reshape, zero data movement.
    return out3.reshape(batch, c_out, height, width)


def init_weightnet_params(key, in_channel, out_channel, hidden_unit=(8, 8)):
    """PyTorch Conv2d default init: U(-1/sqrt(fan_in), +1/sqrt(fan_in))."""
    dims = [in_channel, *hidden_unit, out_channel]
    params = []
    for li in range(len(dims) - 1):
        key, kw, kb = jax.random.split(key, 3)
        bound = 1.0 / float(dims[li]) ** 0.5
        w = jax.random.uniform(kw, (dims[li + 1], dims[li], 1, 1),
                               jnp.float32, -bound, bound)
        b = jax.random.uniform(kb, (dims[li + 1],), jnp.float32, -bound, bound)
        params.append((w, b))
    return params


def _reference_forward(x_nchw, params):
    """Pure-JAX reference (stack of 1x1 convs + ReLU), for validation."""
    x = x_nchw
    for w, b in params:
        x = jnp.einsum("oc,bchw->bohw", w[:, :, 0, 0], x) + b[None, :, None, None]
        x = jnp.maximum(x, 0.0)
    return x


if __name__ == "__main__":
    key = jax.random.PRNGKey(0)
    k_x, k_p = jax.random.split(key)

    B, C_in, H, W = 2, 4, 16, 16
    C_out = 16
    x = jax.random.normal(k_x, (B, C_in, H, W), jnp.float32)
    params = init_weightnet_params(k_p, C_in, C_out, hidden_unit=(8, 8))

    out = jax.block_until_ready(weightnet_forward(x, params))
    ref = _reference_forward(x, params)

    assert out.shape == (B, C_out, H, W), out.shape
    assert jnp.allclose(out, ref, atol=1e-5, rtol=1e-5), "mismatch vs reference"
    print("KERNEL_OK")
</pallas_src>

<mosaic_0001>
module attributes {stable_mosaic.version = 11 : i64} {
  func.func @kernel(%arg0: i32, %arg1: i32, %arg2: memref<1x4x256xf32, #tpu.memory_space<vmem>>, %arg3: memref<4x8x1xf32, #tpu.memory_space<vmem>>, %arg4: memref<8x1xf32, #tpu.memory_space<vmem>>, %arg5: memref<8x8x1xf32, #tpu.memory_space<vmem>>, %arg6: memref<8x1xf32, #tpu.memory_space<vmem>>, %arg7: memref<8x16x1xf32, #tpu.memory_space<vmem>>, %arg8: memref<16x1xf32, #tpu.memory_space<vmem>>, %arg9: memref<1x16x256xf32, #tpu.memory_space<vmem>>) attributes {dimension_semantics = [#tpu.dimension_semantics<parallel>, #tpu.dimension_semantics<parallel>], iteration_bounds = array<i64: 2, 1>, scalar_prefetch = 0 : i64, scratch_operands = 0 : i64, tpu.core_type = #tpu.core_type<tc>, window_params = [{transform_indices = @transform_0, window_bounds = array<i64: 1, 4, 256>}, {pipeline_mode = #tpu.pipeline_mode<synchronous>, transform_indices = @transform_1, window_bounds = array<i64: 4, 8, 1>}, {pipeline_mode = #tpu.pipeline_mode<synchronous>, transform_indices = @transform_2, window_bounds = array<i64: 8, 1>}, {pipeline_mode = #tpu.pipeline_mode<synchronous>, transform_indices = @transform_3, window_bounds = array<i64: 8, 8, 1>}, {pipeline_mode = #tpu.pipeline_mode<synchronous>, transform_indices = @transform_4, window_bounds = array<i64: 8, 1>}, {pipeline_mode = #tpu.pipeline_mode<synchronous>, transform_indices = @transform_5, window_bounds = array<i64: 8, 16, 1>}, {pipeline_mode = #tpu.pipeline_mode<synchronous>, transform_indices = @transform_6, window_bounds = array<i64: 16, 1>}, {transform_indices = @transform_7, window_bounds = array<i64: 1, 16, 256>}]} {
    %c0 = arith.constant 0 : index
    %c0_0 = arith.constant 0 : index
    %c0_1 = arith.constant 0 : index
    %0 = vector.load %arg2[%c0, %c0_0, %c0_1] : memref<1x4x256xf32, #tpu.memory_space<vmem>>, vector<1x4x256xf32>
    %1 = vector.extract_strided_slice %0 {offsets = [0, 0, 0], sizes = [1, 1, 256], strides = [1, 1, 1]} : vector<1x4x256xf32> to vector<1x1x256xf32>
    %c0_2 = arith.constant 0 : index
    %c0_3 = arith.constant 0 : index
    %c0_4 = arith.constant 0 : index
    %2 = vector.load %arg3[%c0_2, %c0_3, %c0_4] : memref<4x8x1xf32, #tpu.memory_space<vmem>>, vector<1x8x1xf32>
    %3 = vector.shape_cast %2 : vector<1x8x1xf32> to vector<8x1xf32>
    %4 = vector.shape_cast %3 : vector<8x1xf32> to vector<1x8x1xf32>
    %5 = vector.broadcast %1 : vector<1x1x256xf32> to vector<1x8x256xf32>
    %6 = vector.broadcast %4 : vector<1x8x1xf32> to vector<1x8x256xf32>
    %7 = arith.mulf %5, %6 : vector<1x8x256xf32>
    %8 = vector.extract_strided_slice %0 {offsets = [0, 1, 0], sizes = [1, 1, 256], strides = [1, 1, 1]} : vector<1x4x256xf32> to vector<1x1x256xf32>
    %c1 = arith.constant 1 : index
    %c0_5 = arith.constant 0 : index
    %c0_6 = arith.constant 0 : index
    %9 = vector.load %arg3[%c1, %c0_5, %c0_6] : memref<4x8x1xf32, #tpu.memory_space<vmem>>, vector<1x8x1xf32>
    %10 = vector.shape_cast %9 : vector<1x8x1xf32> to vector<8x1xf32>
    %11 = vector.shape_cast %10 : vector<8x1xf32> to vector<1x8x1xf32>
    %12 = vector.broadcast %8 : vector<1x1x256xf32> to vector<1x8x256xf32>
    %13 = vector.broadcast %11 : vector<1x8x1xf32> to vector<1x8x256xf32>
    %14 = arith.mulf %12, %13 : vector<1x8x256xf32>
    %15 = arith.addf %7, %14 : vector<1x8x256xf32>
    %16 = vector.extract_strided_slice %0 {offsets = [0, 2, 0], sizes = [1, 1, 256], strides = [1, 1, 1]} : vector<1x4x256xf32> to vector<1x1x256xf32>
    %c2 = arith.constant 2 : index
    %c0_7 = arith.constant 0 : index
    %c0_8 = arith.constant 0 : index
    %17 = vector.load %arg3[%c2, %c0_7, %c0_8] : memref<4x8x1xf32, #tpu.memory_space<vmem>>, vector<1x8x1xf32>
    %18 = vector.shape_cast %17 : vector<1x8x1xf32> to vector<8x1xf32>
    %19 = vector.shape_cast %18 : vector<8x1xf32> to vector<1x8x1xf32>
    %20 = vector.broadcast %16 : vector<1x1x256xf32> to vector<1x8x256xf32>
    %21 = vector.broadcast %19 : vector<1x8x1xf32> to vector<1x8x256xf32>
    %22 = arith.mulf %20, %21 : vector<1x8x256xf32>
    %23 = arith.addf %15, %22 : vector<1x8x256xf32>
    %24 = vector.extract_strided_slice %0 {offsets = [0, 3, 0], sizes = [1, 1, 256], strides = [1, 1, 1]} : vector<1x4x256xf32> to vector<1x1x256xf32>
    %c3 = arith.constant 3 : index
    %c0_9 = arith.constant 0 : index
    %c0_10 = arith.constant 0 : index
    %25 = vector.load %arg3[%c3, %c0_9, %c0_10] : memref<4x8x1xf32, #tpu.memory_space<vmem>>, vector<1x8x1xf32>
    %26 = vector.shape_cast %25 : vector<1x8x1xf32> to vector<8x1xf32>
    %27 = vector.shape_cast %26 : vector<8x1xf32> to vector<1x8x1xf32>
    %28 = vector.broadcast %24 : vector<1x1x256xf32> to vector<1x8x256xf32>
    %29 = vector.broadcast %27 : vector<1x8x1xf32> to vector<1x8x256xf32>
    %30 = arith.mulf %28, %29 : vector<1x8x256xf32>
    %31 = arith.addf %23, %30 : vector<1x8x256xf32>
    %c0_11 = arith.constant 0 : index
    %c0_12 = arith.constant 0 : index
    %32 = vector.load %arg4[%c0_11, %c0_12] : memref<8x1xf32, #tpu.memory_space<vmem>>, vector<8x1xf32>
    %33 = vector.shape_cast %32 : vector<8x1xf32> to vector<1x8x1xf32>
    %34 = vector.broadcast %33 : vector<1x8x1xf32> to vector<1x8x256xf32>
    %35 = arith.addf %31, %34 : vector<1x8x256xf32>
    %cst = arith.constant 0.000000e+00 : f32
    %36 = vector.broadcast %cst : f32 to vector<1x8x256xf32>
    %37 = arith.maximumf %35, %36 : vector<1x8x256xf32>
    %38 = vector.extract_strided_slice %37 {offsets = [0, 0, 0], sizes = [1, 1, 256], strides = [1, 1, 1]} : vector<1x8x256xf32> to vector<1x1x256xf32>
    %c0_13 = arith.constant 0 : index
    %c0_14 = arith.constant 0 : index
    %c0_15 = arith.constant 0 : index
    %39 = vector.load %arg5[%c0_13, %c0_14, %c0_15] : memref<8x8x1xf32, #tpu.memory_space<vmem>>, vector<1x8x1xf32>
    %40 = vector.shape_cast %39 : vector<1x8x1xf32> to vector<8x1xf32>
    %41 = vector.shape_cast %40 : vector<8x1xf32> to vector<1x8x1xf32>
    %42 = vector.broadcast %38 : vector<1x1x256xf32> to vector<1x8x256xf32>
    %43 = vector.broadcast %41 : vector<1x8x1xf32> to vector<1x8x256xf32>
    %44 = arith.mulf %42, %43 : vector<1x8x256xf32>
    %45 = vector.extract_strided_slice %37 {offsets = [0, 1, 0], sizes = [1, 1, 256], strides = [1, 1, 1]} : vector<1x8x256xf32> to vector<1x1x256xf32>
    %c1_16 = arith.constant 1 : index
    %c0_17 = arith.constant 0 : index
    %c0_18 = arith.constant 0 : index
    %46 = vector.load %arg5[%c1_16, %c0_17, %c0_18] : memref<8x8x1xf32, #tpu.memory_space<vmem>>, vector<1x8x1xf32>
    %47 = vector.shape_cast %46 : vector<1x8x1xf32> to vector<8x1xf32>
    %48 = vector.shape_cast %47 : vector<8x1xf32> to vector<1x8x1xf32>
    %49 = vector.broadcast %45 : vector<1x1x256xf32> to vector<1x8x256xf32>
    %50 = vector.broadcast %48 : vector<1x8x1xf32> to vector<1x8x256xf32>
    %51 = arith.mulf %49, %50 : vector<1x8x256xf32>
    %52 = arith.addf %44, %51 : vector<1x8x256xf32>
    %53 = vector.extract_strided_slice %37 {offsets = [0, 2, 0], sizes = [1, 1, 256], strides = [1, 1, 1]} : vector<1x8x256xf32> to vector<1x1x256xf32>
    %c2_19 = arith.constant 2 : index
    %c0_20 = arith.constant 0 : index
    %c0_21 = arith.constant 0 : index
    %54 = vector.load %arg5[%c2_19, %c0_20, %c0_21] : memref<8x8x1xf32, #tpu.memory_space<vmem>>, vector<1x8x1xf32>
    %55 = vector.shape_cast %54 : vector<1x8x1xf32> to vector<8x1xf32>
    %56 = vector.shape_cast %55 : vector<8x1xf32> to vector<1x8x1xf32>
    %57 = vector.broadcast %53 : vector<1x1x256xf32> to vector<1x8x256xf32>
    %58 = vector.broadcast %56 : vector<1x8x1xf32> to vector<1x8x256xf32>
    %59 = arith.mulf %57, %58 : vector<1x8x256xf32>
    %60 = arith.addf %52, %59 : vector<1x8x256xf32>
    %61 = vector.extract_strided_slice %37 {offsets = [0, 3, 0], sizes = [1, 1, 256], strides = [1, 1, 1]} : vector<1x8x256xf32> to vector<1x1x256xf32>
    %c3_22 = arith.constant 3 : index
    %c0_23 = arith.constant 0 : index
    %c0_24 = arith.constant 0 : index
    %62 = vector.load %arg5[%c3_22, %c0_23, %c0_24] : memref<8x8x1xf32, #tpu.memory_space<vmem>>, vector<1x8x1xf32>
    %63 = vector.shape_cast %62 : vector<1x8x1xf32> to vector<8x1xf32>
    %64 = vector.shape_cast %63 : vector<8x1xf32> to vector<1x8x1xf32>
    %65 = vector.broadcast %61 : vector<1x1x256xf32> to vector<1x8x256xf32>
    %66 = vector.broadcast %64 : vector<1x8x1xf32> to vector<1x8x256xf32>
    %67 = arith.mulf %65, %66 : vector<1x8x256xf32>
    %68 = arith.addf %60, %67 : vector<1x8x256xf32>
    %69 = vector.extract_strided_slice %37 {offsets = [0, 4, 0], sizes = [1, 1, 256], strides = [1, 1, 1]} : vector<1x8x256xf32> to vector<1x1x256xf32>
    %c4 = arith.constant 4 : index
    %c0_25 = arith.constant 0 : index
    %c0_26 = arith.constant 0 : index
    %70 = vector.load %arg5[%c4, %c0_25, %c0_26] : memref<8x8x1xf32, #tpu.memory_space<vmem>>, vector<1x8x1xf32>
    %71 = vector.shape_cast %70 : vector<1x8x1xf32> to vector<8x1xf32>
    %72 = vector.shape_cast %71 : vector<8x1xf32> to vector<1x8x1xf32>
    %73 = vector.broadcast %69 : vector<1x1x256xf32> to vector<1x8x256xf32>
    %74 = vector.broadcast %72 : vector<1x8x1xf32> to vector<1x8x256xf32>
    %75 = arith.mulf %73, %74 : vector<1x8x256xf32>
    %76 = arith.addf %68, %75 : vector<1x8x256xf32>
    %77 = vector.extract_strided_slice %37 {offsets = [0, 5, 0], sizes = [1, 1, 256], strides = [1, 1, 1]} : vector<1x8x256xf32> to vector<1x1x256xf32>
    %c5 = arith.constant 5 : index
    %c0_27 = arith.constant 0 : index
    %c0_28 = arith.constant 0 : index
    %78 = vector.load %arg5[%c5, %c0_27, %c0_28] : memref<8x8x1xf32, #tpu.memory_space<vmem>>, vector<1x8x1xf32>
    %79 = vector.shape_cast %78 : vector<1x8x1xf32> to vector<8x1xf32>
    %80 = vector.shape_cast %79 : vector<8x1xf32> to vector<1x8x1xf32>
    %81 = vector.broadcast %77 : vector<1x1x256xf32> to vector<1x8x256xf32>
    %82 = vector.broadcast %80 : vector<1x8x1xf32> to vector<1x8x256xf32>
    %83 = arith.mulf %81, %82 : vector<1x8x256xf32>
    %84 = arith.addf %76, %83 : vector<1x8x256xf32>
    %85 = vector.extract_strided_slice %37 {offsets = [0, 6, 0], sizes = [1, 1, 256], strides = [1, 1, 1]} : vector<1x8x256xf32> to vector<1x1x256xf32>
    %c6 = arith.constant 6 : index
    %c0_29 = arith.constant 0 : index
    %c0_30 = arith.constant 0 : index
    %86 = vector.load %arg5[%c6, %c0_29, %c0_30] : memref<8x8x1xf32, #tpu.memory_space<vmem>>, vector<1x8x1xf32>
    %87 = vector.shape_cast %86 : vector<1x8x1xf32> to vector<8x1xf32>
    %88 = vector.shape_cast %87 : vector<8x1xf32> to vector<1x8x1xf32>
    %89 = vector.broadcast %85 : vector<1x1x256xf32> to vector<1x8x256xf32>
    %90 = vector.broadcast %88 : vector<1x8x1xf32> to vector<1x8x256xf32>
    %91 = arith.mulf %89, %90 : vector<1x8x256xf32>
    %92 = arith.addf %84, %91 : vector<1x8x256xf32>
    %93 = vector.extract_strided_slice %37 {offsets = [0, 7, 0], sizes = [1, 1, 256], strides = [1, 1, 1]} : vector<1x8x256xf32> to vector<1x1x256xf32>
    %c7 = arith.constant 7 : index
    %c0_31 = arith.constant 0 : index
    %c0_32 = arith.constant 0 : index
    %94 = vector.load %arg5[%c7, %c0_31, %c0_32] : memref<8x8x1xf32, #tpu.memory_space<vmem>>, vector<1x8x1xf32>
    %95 = vector.shape_cast %94 : vector<1x8x1xf32> to vector<8x1xf32>
    %96 = vector.shape_cast %95 : vector<8x1xf32> to vector<1x8x1xf32>
    %97 = vector.broadcast %93 : vector<1x1x256xf32> to vector<1x8x256xf32>
    %98 = vector.broadcast %96 : vector<1x8x1xf32> to vector<1x8x256xf32>
    %99 = arith.mulf %97, %98 : vector<1x8x256xf32>
    %100 = arith.addf %92, %99 : vector<1x8x256xf32>
    %c0_33 = arith.constant 0 : index
    %c0_34 = arith.constant 0 : index
    %101 = vector.load %arg6[%c0_33, %c0_34] : memref<8x1xf32, #tpu.memory_space<vmem>>, vector<8x1xf32>
    %102 = vector.shape_cast %101 : vector<8x1xf32> to vector<1x8x1xf32>
    %103 = vector.broadcast %102 : vector<1x8x1xf32> to vector<1x8x256xf32>
    %104 = arith.addf %100, %103 : vector<1x8x256xf32>
    %cst_35 = arith.constant 0.000000e+00 : f32
    %105 = vector.broadcast %cst_35 : f32 to vector<1x8x256xf32>
    %106 = arith.maximumf %104, %105 : vector<1x8x256xf32>
    %107 = vector.extract_strided_slice %106 {offsets = [0, 0, 0], sizes = [1, 1, 256], strides = [1, 1, 1]} : vector<1x8x256xf32> to vector<1x1x256xf32>
    %c0_36 = arith.constant 0 : index
    %c0_37 = arith.constant 0 : index
    %c0_38 = arith.constant 0 : index
    %108 = vector.load %arg7[%c0_36, %c0_37, %c0_38] : memref<8x16x1xf32, #tpu.memory_space<vmem>>, vector<1x16x1xf32>
    %109 = vector.shape_cast %108 : vector<1x16x1xf32> to vector<16x1xf32>
    %110 = vector.shape_cast %109 : vector<16x1xf32> to vector<1x16x1xf32>
    %111 = vector.broadcast %107 : vector<1x1x256xf32> to vector<1x16x256xf32>
    %112 = vector.broadcast %110 : vector<1x16x1xf32> to vector<1x16x256xf32>
    %113 = arith.mulf %111, %112 : vector<1x16x256xf32>
    %114 = vector.extract_strided_slice %106 {offsets = [0, 1, 0], sizes = [1, 1, 256], strides = [1, 1, 1]} : vector<1x8x256xf32> to vector<1x1x256xf32>
    %c1_39 = arith.constant 1 : index
    %c0_40 = arith.constant 0 : index
    %c0_41 = arith.constant 0 : index
    %115 = vector.load %arg7[%c1_39, %c0_40, %c0_41] : memref<8x16x1xf32, #tpu.memory_space<vmem>>, vector<1x16x1xf32>
    %116 = vector.shape_cast %115 : vector<1x16x1xf32> to vector<16x1xf32>
    %117 = vector.shape_cast %116 : vector<16x1xf32> to vector<1x16x1xf32>
    %118 = vector.broadcast %114 : vector<1x1x256xf32> to vector<1x16x256xf32>
    %119 = vector.broadcast %117 : vector<1x16x1xf32> to vector<1x16x256xf32>
    %120 = arith.mulf %118, %119 : vector<1x16x256xf32>
    %121 = arith.addf %113, %120 : vector<1x16x256xf32>
    %122 = vector.extract_strided_slice %106 {offsets = [0, 2, 0], sizes = [1, 1, 256], strides = [1, 1, 1]} : vector<1x8x256xf32> to vector<1x1x256xf32>
    %c2_42 = arith.constant 2 : index
    %c0_43 = arith.constant 0 : index
    %c0_44 = arith.constant 0 : index
    %123 = vector.load %arg7[%c2_42, %c0_43, %c0_44] : memref<8x16x1xf32, #tpu.memory_space<vmem>>, vector<1x16x1xf32>
    %124 = vector.shape_cast %123 : vector<1x16x1xf32> to vector<16x1xf32>
    %125 = vector.shape_cast %124 : vector<16x1xf32> to vector<1x16x1xf32>
    %126 = vector.broadcast %122 : vector<1x1x256xf32> to vector<1x16x256xf32>
    %127 = vector.broadcast %125 : vector<1x16x1xf32> to vector<1x16x256xf32>
    %128 = arith.mulf %126, %127 : vector<1x16x256xf32>
    %129 = arith.addf %121, %128 : vector<1x16x256xf32>
    %130 = vector.extract_strided_slice %106 {offsets = [0, 3, 0], sizes = [1, 1, 256], strides = [1, 1, 1]} : vector<1x8x256xf32> to vector<1x1x256xf32>
    %c3_45 = arith.constant 3 : index
    %c0_46 = arith.constant 0 : index
    %c0_47 = arith.constant 0 : index
    %131 = vector.load %arg7[%c3_45, %c0_46, %c0_47] : memref<8x16x1xf32, #tpu.memory_space<vmem>>, vector<1x16x1xf32>
    %132 = vector.shape_cast %131 : vector<1x16x1xf32> to vector<16x1xf32>
    %133 = vector.shape_cast %132 : vector<16x1xf32> to vector<1x16x1xf32>
    %134 = vector.broadcast %130 : vector<1x1x256xf32> to vector<1x16x256xf32>
    %135 = vector.broadcast %133 : vector<1x16x1xf32> to vector<1x16x256xf32>
    %136 = arith.mulf %134, %135 : vector<1x16x256xf32>
    %137 = arith.addf %129, %136 : vector<1x16x256xf32>
    %138 = vector.extract_strided_slice %106 {offsets = [0, 4, 0], sizes = [1, 1, 256], strides = [1, 1, 1]} : vector<1x8x256xf32> to vector<1x1x256xf32>
    %c4_48 = arith.constant 4 : index
    %c0_49 = arith.constant 0 : index
    %c0_50 = arith.constant 0 : index
    %139 = vector.load %arg7[%c4_48, %c0_49, %c0_50] : memref<8x16x1xf32, #tpu.memory_space<vmem>>, vector<1x16x1xf32>
    %140 = vector.shape_cast %139 : vector<1x16x1xf32> to vector<16x1xf32>
    %141 = vector.shape_cast %140 : vector<16x1xf32> to vector<1x16x1xf32>
    %142 = vector.broadcast %138 : vector<1x1x256xf32> to vector<1x16x256xf32>
    %143 = vector.broadcast %141 : vector<1x16x1xf32> to vector<1x16x256xf32>
    %144 = arith.mulf %142, %143 : vector<1x16x256xf32>
    %145 = arith.addf %137, %144 : vector<1x16x256xf32>
    %146 = vector.extract_strided_slice %106 {offsets = [0, 5, 0], sizes = [1, 1, 256], strides = [1, 1, 1]} : vector<1x8x256xf32> to vector<1x1x256xf32>
    %c5_51 = arith.constant 5 : index
    %c0_52 = arith.constant 0 : index
    %c0_53 = arith.constant 0 : index
    %147 = vector.load %arg7[%c5_51, %c0_52, %c0_53] : memref<8x16x1xf32, #tpu.memory_space<vmem>>, vector<1x16x1xf32>
    %148 = vector.shape_cast %147 : vector<1x16x1xf32> to vector<16x1xf32>
    %149 = vector.shape_cast %148 : vector<16x1xf32> to vector<1x16x1xf32>
    %150 = vector.broadcast %146 : vector<1x1x256xf32> to vector<1x16x256xf32>
    %151 = vector.broadcast %149 : vector<1x16x1xf32> to vector<1x16x256xf32>
    %152 = arith.mulf %150, %151 : vector<1x16x256xf32>
    %153 = arith.addf %145, %152 : vector<1x16x256xf32>
    %154 = vector.extract_strided_slice %106 {offsets = [0, 6, 0], sizes = [1, 1, 256], strides = [1, 1, 1]} : vector<1x8x256xf32> to vector<1x1x256xf32>
    %c6_54 = arith.constant 6 : index
    %c0_55 = arith.constant 0 : index
    %c0_56 = arith.constant 0 : index
    %155 = vector.load %arg7[%c6_54, %c0_55, %c0_56] : memref<8x16x1xf32, #tpu.memory_space<vmem>>, vector<1x16x1xf32>
    %156 = vector.shape_cast %155 : vector<1x16x1xf32> to vector<16x1xf32>
    %157 = vector.shape_cast %156 : vector<16x1xf32> to vector<1x16x1xf32>
    %158 = vector.broadcast %154 : vector<1x1x256xf32> to vector<1x16x256xf32>
    %159 = vector.broadcast %157 : vector<1x16x1xf32> to vector<1x16x256xf32>
    %160 = arith.mulf %158, %159 : vector<1x16x256xf32>
    %161 = arith.addf %153, %160 : vector<1x16x256xf32>
    %162 = vector.extract_strided_slice %106 {offsets = [0, 7, 0], sizes = [1, 1, 256], strides = [1, 1, 1]} : vector<1x8x256xf32> to vector<1x1x256xf32>
    %c7_57 = arith.constant 7 : index
    %c0_58 = arith.constant 0 : index
    %c0_59 = arith.constant 0 : index
    %163 = vector.load %arg7[%c7_57, %c0_58, %c0_59] : memref<8x16x1xf32, #tpu.memory_space<vmem>>, vector<1x16x1xf32>
    %164 = vector.shape_cast %163 : vector<1x16x1xf32> to vector<16x1xf32>
    %165 = vector.shape_cast %164 : vector<16x1xf32> to vector<1x16x1xf32>
    %166 = vector.broadcast %162 : vector<1x1x256xf32> to vector<1x16x256xf32>
    %167 = vector.broadcast %165 : vector<1x16x1xf32> to vector<1x16x256xf32>
    %168 = arith.mulf %166, %167 : vector<1x16x256xf32>
    %169 = arith.addf %161, %168 : vector<1x16x256xf32>
    %c0_60 = arith.constant 0 : index
    %c0_61 = arith.constant 0 : index
    %170 = vector.load %arg8[%c0_60, %c0_61] : memref<16x1xf32, #tpu.memory_space<vmem>>, vector<16x1xf32>
    %171 = vector.shape_cast %170 : vector<16x1xf32> to vector<1x16x1xf32>
    %172 = vector.broadcast %171 : vector<1x16x1xf32> to vector<1x16x256xf32>
    %173 = arith.addf %169, %172 : vector<1x16x256xf32>
    %cst_62 = arith.constant 0.000000e+00 : f32
    %174 = vector.broadcast %cst_62 : f32 to vector<1x16x256xf32>
    %175 = arith.maximumf %173, %174 : vector<1x16x256xf32>
    %c0_63 = arith.constant 0 : index
    %c0_64 = arith.constant 0 : index
    %c0_65 = arith.constant 0 : index
    %176 = vector.load %arg9[%c0_63, %c0_64, %c0_65] : memref<1x16x256xf32, #tpu.memory_space<vmem>>, vector<1x16x256xf32>
    tpu.vector_store %arg9[%c0_63, %c0_64, %c0_65], %175 {strides = array<i32>} : memref<1x16x256xf32, #tpu.memory_space<vmem>>, vector<1x16x256xf32>,
    return
  }
  func.func @transform_0(%arg0: i32, %arg1: i32) -> (i32, i32, i32) {
    %c0_i32 = arith.constant 0 : i32
    %c0_i32_0 = arith.constant 0 : i32
    return %arg0, %c0_i32, %arg1 : i32, i32, i32
  }
  func.func @transform_1(%arg0: i32, %arg1: i32) -> (i32, i32, i32) {
    %c0_i32 = arith.constant 0 : i32
    %c0_i32_0 = arith.constant 0 : i32
    %c0_i32_1 = arith.constant 0 : i32
    %c0_i32_2 = arith.constant 0 : i32
    return %c0_i32, %c0_i32_0, %c0_i32_1 : i32, i32, i32
  }
  func.func @transform_2(%arg0: i32, %arg1: i32) -> (i32, i32) {
    %c0_i32 = arith.constant 0 : i32
    %c0_i32_0 = arith.constant 0 : i32
    %c0_i32_1 = arith.constant 0 : i32
    return %c0_i32, %c0_i32_0 : i32, i32
  }
  func.func @transform_3(%arg0: i32, %arg1: i32) -> (i32, i32, i32) {
    %c0_i32 = arith.constant 0 : i32
    %c0_i32_0 = arith.constant 0 : i32
    %c0_i32_1 = arith.constant 0 : i32
    %c0_i32_2 = arith.constant 0 : i32
    return %c0_i32, %c0_i32_0, %c0_i32_1 : i32, i32, i32
  }
  func.func @transform_4(%arg0: i32, %arg1: i32) -> (i32, i32) {
    %c0_i32 = arith.constant 0 : i32
    %c0_i32_0 = arith.constant 0 : i32
    %c0_i32_1 = arith.constant 0 : i32
    return %c0_i32, %c0_i32_0 : i32, i32
  }
  func.func @transform_5(%arg0: i32, %arg1: i32) -> (i32, i32, i32) {
    %c0_i32 = arith.constant 0 : i32
    %c0_i32_0 = arith.constant 0 : i32
    %c0_i32_1 = arith.constant 0 : i32
    %c0_i32_2 = arith.constant 0 : i32
    return %c0_i32, %c0_i32_0, %c0_i32_1 : i32, i32, i32
  }
  func.func @transform_6(%arg0: i32, %arg1: i32) -> (i32, i32) {
    %c0_i32 = arith.constant 0 : i32
    %c0_i32_0 = arith.constant 0 : i32
    %c0_i32_1 = arith.constant 0 : i32
    return %c0_i32, %c0_i32_0 : i32, i32
  }
  func.func @transform_7(%arg0: i32, %arg1: i32) -> (i32, i32, i32) {
    %c0_i32 = arith.constant 0 : i32
    %c0_i32_0 = arith.constant 0 : i32
    return %arg0, %c0_i32, %arg1 : i32, i32, i32
  }
}

</mosaic_0001>

<bundles_post_ra>
// kernel: weightnet_forward.1
= control target key start
LH: loop header
LB: loop body
LE: loop exit
PB: predicated region body
PF: predicated region fallthrough
CT: control target
= control target key end

     0   :  { %s926_s24 = smov 0   ;;  %s928_s25 = smov 0   ;;  %s1087_s0 = inlined_call_operand.vmem [shape: f32[2,4,256], index: 0, kind: input, shape index: {}]   ;;  %s1088_s1 = inlined_call_operand.vmem [shape: f32[4,8,1], index: 1, kind: input, shape index: {}]   ;;  %s1089_s2 = inlined_call_operand.vmem [shape: f32[8,1], index: 2, kind: input, shape index: {}]   ;;  %s1090_s3 = inlined_call_operand.vmem [shape: f32[8,8,1], index: 3, kind: input, shape index: {}]   ;;  %s1091_s4 = inlined_call_operand.vmem [shape: f32[8,1], index: 4, kind: input, shape index: {}]   ;;  %s1092_s5 = inlined_call_operand.vmem [shape: f32[8,16,1], index: 5, kind: input, shape index: {}]   ;;  %s1093_s6 = inlined_call_operand.vmem [shape: f32[16,1], index: 6, kind: input, shape index: {}]   ;;  %s1094_s7 = inlined_call_operand.vmem [shape: f32[2,16,256], index: 7, kind: output, shape index: {}]  }
   0x1   :  { %s930_s26 = smov 0  }
   0x2 LB: > { %s29_s27 = sadd.s32 1, %s879_s25  ;;  %p800_p0 = scmp.ge.s32.totalorder %s883_s26, 1  ;;  %s883_s26 = sphi %s930_s26, %s17_s26   ;;  %s879_s25 = sphi %s928_s25, %s1096_s25   ;;  %s875_s24 = sphi %s926_s24, %s1095_s24  }
   0x3   : > { %p31_p1 = scmp.ge.s32.totalorder %s29_s27, 2  ;;  %p258_p2 = scmp.lt.s32.totalorder %s883_s26, 3 }
   0x5   : > { %s1098_s27 = smov (%p31_p1, %s29_s27), 0  ;;  %p259_p3 = pnand %p800_p0, %p258_p2 }
   0x6   : > { %p299_p4 = scmp.lt.s32.totalorder (!%p259_p3), %s875_s24, 1 }
   0x7   : > { %262 = sbr.rel (%p259_p3) target bundleno = 218 (0xda), region = 48 }
   0xc   : > { %v385_v0 = vld [vmem:[%s1089_s2] sm:$0xff]  ;;  %v806_v1 = vld [vmem:[%s1088_s1 + $0x10] sm:$0xff]  ;;  %v885_v3 = vmov 0   ;;  %v807_v5 = vld [vmem:[%s1088_s1 + $0x18] sm:$0xff]  ;;  %s1100_s24 = smov (!%p299_p4, %s875_s24), 1 }
   0xd   : > { %v319_v2 = vld [vmem:[%s1088_s1] sm:$0xff]  ;;  %860 = vset.pattern.permute.xlu2 %v885_v3  ;;  %859 = vset.pattern.permute.xlu1 %v885_v3  ;;  %v805_v6 = vld [vmem:[%s1088_s1 + $0x8] sm:$0xff]  ;;  %v810_v7 = vld [vmem:[%s1090_s3 + $0x18] sm:$0xff]  ;;  %s831_s12 = sshll.u32 %s1100_s24, 3  ;;  %s832_s16 = sshll.u32 %s1100_s24, 5 }
   0xe   : > { %858 = vset.pattern.permute.xlu0 %v885_v3  ;;  %388 = vperm.xlu2 %860, %v385_v0   ;;  %v395_v4 = vld [vmem:[%s1090_s3] sm:$0xff]  ;;  %v809_v8 = vld [vmem:[%s1090_s3 + $0x10] sm:$0xff]  ;;  %v808_v9 = vld [vmem:[%s1090_s3 + $0x8] sm:$0xff]  ;;  %s306_s15 = scalar_lea.vmem %s1087_s0, %s831_s12  ;;  %s316_s19 = scalar_lea.vmem %s1094_s7, %s832_s16 }
   0xf   : > { %361 = vperm.xlu1 %859, %v806_v1   ;;  %329 = vperm.xlu0 %858, %v319_v2   ;;  %v813_v10 = vld [vmem:[%s1090_s3 + $0x30] sm:$0xff]  ;;  %v812_v11 = vld [vmem:[%s1090_s3 + $0x28] sm:$0xff]  ;;  %v811_v12 = vld [vmem:[%s1090_s3 + $0x20] sm:$0xff] }
  0x10   : > { %v506_v13 = vld [vmem:[%s1092_s5] sm:$0xff]  ;;  %v814_v15 = vld [vmem:[%s1090_s3 + $0x38] sm:$0xff]  ;;  %v815_v17 = vld [vmem:[%s1092_s5 + $0x10] sm:$0xff] }
  0x11   : > { %v496_v14 = vld [vmem:[%s1091_s4] sm:$0xff]  ;;  %v816_v16 = vld [vmem:[%s1092_s5 + $0x18] sm:$0xff]  ;;  %v507_v18 = vld [vmem:[%s1092_s5 + $0x8] sm:$0xff] }
  0x12   : > { %v819_v19 = vld [vmem:[%s1092_s5 + $0x30] sm:$0xff]  ;;  %v818_v20 = vld [vmem:[%s1092_s5 + $0x28] sm:$0xff]  ;;  %v817_v21 = vld [vmem:[%s1092_s5 + $0x20] sm:$0xff] }
  0x13   : > { %v822_v22 = vld [vmem:[%s1092_s5 + $0x48] sm:$0xff]  ;;  %v821_v23 = vld [vmem:[%s1092_s5 + $0x40] sm:$0xff]  ;;  %v820_v24 = vld [vmem:[%s1092_s5 + $0x38] sm:$0xff] }
  0x14   : > { %v825_v25 = vld [vmem:[%s1092_s5 + $0x60] sm:$0xff]  ;;  %v824_v26 = vld [vmem:[%s1092_s5 + $0x58] sm:$0xff]  ;;  %v823_v27 = vld [vmem:[%s1092_s5 + $0x50] sm:$0xff] }
  0x15   : > { %v828_v28 = vld [vmem:[%s1092_s5 + $0x78] sm:$0xff]  ;;  %v827_v29 = vld [vmem:[%s1092_s5 + $0x70] sm:$0xff]  ;;  %v826_v30 = vld [vmem:[%s1092_s5 + $0x68] sm:$0xff] }
  0x16   : > { %400 = vperm.xlu2 %860, %v395_v4   ;;  %v686_v31 = vld [vmem:[%s1093_s6 + $0x8] sm:$0xff]  ;;  %v685_v32 = vld [vmem:[%s1093_s6] sm:$0xff] }
  0x17   : > { %378 = vperm.xlu1 %859, %v807_v5   ;;  %344 = vperm.xlu0 %858, %v805_v6   ;;  %v318_v35 = vld [vmem:[%s306_s15] sm:$0xff] }
  0x18   : > { %v321_v38 = vperm.slane %v318_v35, 0  ;;  %v322_v39 = vperm.slane %v318_v35, 4  ;;  %v336_v40 = vperm.slane %v318_v35, 1  ;;  %v337_v41 = vperm.slane %v318_v35, 5 }
  0x19   : > { %v353_v43 = vperm.slane %v318_v35, 2  ;;  %v354_v44 = vperm.slane %v318_v35, 6  ;;  %v370_v45 = vperm.slane %v318_v35, 3  ;;  %v371_v46 = vperm.slane %v318_v35, 7 }
  0x1a   : > { %v325_v47 = vperm.slane %v321_v38, 0  ;;  %v326_v48 = vperm.slane %v322_v39, 0  ;;  %v340_v49 = vperm.slane %v336_v40, 1  ;;  %v341_v50 = vperm.slane %v337_v41, 1 }
  0x1b   : > { %v357_v51 = vperm.slane %v353_v43, 2  ;;  %v358_v52 = vperm.slane %v354_v44, 2  ;;  %v374_v54 = vperm.slane %v370_v45, 3  ;;  %v375_v55 = vperm.slane %v371_v46, 3 }
  0x1e   : > { %437 = vperm.xlu2 %860, %v810_v7  }
  0x1f   : > { %424 = vperm.xlu1 %859, %v809_v8   ;;  %411 = vperm.xlu0 %858, %v808_v9  }
  0x26   : > { %476 = vperm.xlu2 %860, %v813_v10  }
  0x27   : > { %463 = vperm.xlu1 %859, %v812_v11   ;;  %450 = vperm.xlu0 %858, %v811_v12  }
  0x2e   : > { %512 = vperm.xlu2 %860, %v506_v13  }
  0x2f   : > { %499 = vperm.xlu1 %859, %v496_v14   ;;  %489 = vperm.xlu0 %858, %v814_v15  }
  0x36   : > { %536 = vperm.xlu2 %860, %v816_v16  }
  0x37   : > { %531 = vperm.xlu1 %859, %v815_v17   ;;  %517 = vperm.xlu0 %858, %v507_v18  }
  0x3e   : > { %577 = vperm.xlu2 %860, %v819_v19  }
  0x3f   : > { %559 = vperm.xlu1 %859, %v818_v20   ;;  %554 = vperm.xlu0 %858, %v817_v21  }
  0x46   : > { %605 = vperm.xlu2 %860, %v822_v22  }
  0x47   : > { %600 = vperm.xlu1 %859, %v821_v23   ;;  %582 = vperm.xlu0 %858, %v820_v24  }
  0x4e   : > { %646 = vperm.xlu2 %860, %v825_v25  }
  0x4f   : > { %628 = vperm.xlu1 %859, %v824_v26   ;;  %623 = vperm.xlu0 %858, %v823_v27  }
  0x56   : > { %674 = vperm.xlu2 %860, %v828_v28  }
  0x57   : > { %669 = vperm.xlu1 %859, %v827_v29   ;;  %651 = vperm.xlu0 %858, %v826_v30  }
  0x5f   : > { %694 = vperm.xlu1 %859, %v686_v31   ;;  %689 = vperm.xlu0 %858, %v685_v32  }
  0x68   : > { %v389_v33 = vpop.permute.xlu2 %388 }
  0x70   : > { %v401_v34 = vpop.permute.xlu2 %400 }
  0x78   : > { %v438_v42 = vpop.permute.xlu2 %437 }
  0x80   : > { %v477_v1 = vpop.permute.xlu2 %476 }
  0x81   : > { %v362_v36 = vpop.permute.xlu1 %361  ;;  %v330_v37 = vpop.permute.xlu0 %329 }
  0x82   : > { %v332_v57 = vmul.f32 %v330_v37, %v325_v47  ;;  %v333_v58 = vmul.f32 %v330_v37, %v326_v48  ;;  %v364_v61 = vmul.f32 %v362_v36, %v357_v51  ;;  %v365_v62 = vmul.f32 %v362_v36, %v358_v52 }
  0x88   : > { %v1050_v20 = vpop.permute.xlu2 %512 }
  0x89   : > { %v379_v53 = vpop.permute.xlu1 %378  ;;  %v345_v56 = vpop.permute.xlu0 %344 }
  0x8a   : > { %v347_v59 = vmul.f32 %v345_v56, %v340_v49  ;;  %v348_v60 = vmul.f32 %v345_v56, %v341_v50  ;;  %v381_v2 = vmul.f32 %v379_v53, %v374_v54  ;;  %v382_v3 = vmul.f32 %v379_v53, %v375_v55 }
  0x8c   : > { %v349_v63 = vadd.f32 %v347_v59, %v332_v57  ;;  %v350_v0 = vadd.f32 %v348_v60, %v333_v58 }
  0x8e   : > { %v366_v4 = vadd.f32 %v364_v61, %v349_v63  ;;  %v367_v5 = vadd.f32 %v365_v62, %v350_v0 }
  0x90   : > { %v383_v6 = vadd.f32 %v381_v2, %v366_v4  ;;  %v384_v7 = vadd.f32 %v382_v3, %v367_v5  ;;  %v537_v54 = vpop.permute.xlu2 %536 }
  0x91   : > { %v425_v8 = vpop.permute.xlu1 %424  ;;  %v412_v9 = vpop.permute.xlu0 %411 }
  0x92   : > { %v391_v10 = vadd.f32 %v389_v33, %v383_v6  ;;  %v392_v11 = vadd.f32 %v389_v33, %v384_v7 }
  0x94   : > { %v393_v12 = vmax.f32 %v391_v10, 0.0  ;;  %v394_v13 = vmax.f32 %v392_v11, 0.0 }
  0x96   : > { %v396_v14 = vperm.slane %v393_v12, 0  ;;  %v397_v15 = vperm.slane %v394_v13, 0  ;;  %v420_v16 = vperm.slane %v393_v12, 2  ;;  %v421_v17 = vperm.slane %v394_v13, 2 }
  0x97   : > { %v407_v18 = vperm.slane %v393_v12, 1  ;;  %v408_v19 = vperm.slane %v394_v13, 1  ;;  %v433_v27 = vperm.slane %v393_v12, 3  ;;  %v434_v28 = vperm.slane %v394_v13, 3 }
  0x98   : > { %v403_v21 = vmul.f32 %v401_v34, %v396_v14  ;;  %v404_v22 = vmul.f32 %v401_v34, %v397_v15  ;;  %v427_v29 = vmul.f32 %v425_v8, %v420_v16  ;;  %v428_v30 = vmul.f32 %v425_v8, %v421_v17  ;;  %v578_v5 = vpop.permute.xlu2 %577 }
  0x99   : > { %v414_v23 = vmul.f32 %v412_v9, %v407_v18  ;;  %v415_v24 = vmul.f32 %v412_v9, %v408_v19  ;;  %v464_v25 = vpop.permute.xlu1 %463  ;;  %v451_v26 = vpop.permute.xlu0 %450  ;;  %v446_v33 = vperm.slane %v393_v12, 4  ;;  %v447_v35 = vperm.slane %v394_v13, 4 }
  0x9a   : > { %v440_v38 = vmul.f32 %v438_v42, %v433_v27  ;;  %v441_v39 = vmul.f32 %v438_v42, %v434_v28  ;;  %v459_v40 = vperm.slane %v393_v12, 5  ;;  %v460_v41 = vperm.slane %v394_v13, 5 }
  0x9b   : > { %v416_v31 = vadd.f32 %v414_v23, %v403_v21  ;;  %v417_v32 = vadd.f32 %v415_v24, %v404_v22  ;;  %v453_v44 = vmul.f32 %v451_v26, %v446_v33  ;;  %v454_v45 = vmul.f32 %v451_v26, %v447_v35 }
  0x9c   : > { %v472_v46 = vperm.slane %v393_v12, 6  ;;  %v473_v47 = vperm.slane %v394_v13, 6  ;;  %v466_v48 = vmul.f32 %v464_v25, %v459_v40  ;;  %v467_v49 = vmul.f32 %v464_v25, %v460_v41 }
  0x9d   : > { %v429_v36 = vadd.f32 %v427_v29, %v416_v31  ;;  %v430_v37 = vadd.f32 %v428_v30, %v417_v32  ;;  %v485_v60 = vperm.slane %v393_v12, 7  ;;  %v486_v61 = vperm.slane %v394_v13, 7 }
  0x9e   : > { %v479_v57 = vmul.f32 %v477_v1, %v472_v46  ;;  %v480_v58 = vmul.f32 %v477_v1, %v473_v47 }
  0x9f   : > { %v442_v43 = vadd.f32 %v440_v38, %v429_v36  ;;  %v443_v34 = vadd.f32 %v441_v39, %v430_v37 }
  0xa0   : > { %v606_v1 = vpop.permute.xlu2 %605 }
  0xa1   : > { %v455_v50 = vadd.f32 %v453_v44, %v442_v43  ;;  %v456_v51 = vadd.f32 %v454_v45, %v443_v34  ;;  %v500_v52 = vpop.permute.xlu1 %499  ;;  %v490_v53 = vpop.permute.xlu0 %489 }
  0xa2   : > { %v492_v62 = vmul.f32 %v490_v53, %v485_v60  ;;  %v493_v63 = vmul.f32 %v490_v53, %v486_v61 }
  0xa3   : > { %v468_v55 = vadd.f32 %v466_v48, %v455_v50  ;;  %v469_v56 = vadd.f32 %v467_v49, %v456_v51 }
  0xa5   : > { %v481_v42 = vadd.f32 %v479_v57, %v468_v55  ;;  %v482_v59 = vadd.f32 %v480_v58, %v469_v56 }
  0xa7   : > { %v494_v3 = vadd.f32 %v492_v62, %v481_v42  ;;  %v495_v4 = vadd.f32 %v493_v63, %v482_v59 }
  0xa8   : > { %v647_v40 = vpop.permute.xlu2 %646 }
  0xa9   : > { %v532_v0 = vpop.permute.xlu1 %531  ;;  %v518_v2 = vpop.permute.xlu0 %517  ;;  %v502_v6 = vadd.f32 %v500_v52, %v494_v3  ;;  %v503_v7 = vadd.f32 %v500_v52, %v495_v4 }
  0xab   : > { %v1052_v10 = vmax.f32 %v502_v6, 0.0  ;;  %v1054_v11 = vmax.f32 %v503_v7, 0.0 }
  0xad   : > { %v508_v14 = vperm.slane %v1052_v10, 0  ;;  %v509_v12 = vperm.slane %v1054_v11, 0  ;;  %v527_v13 = vperm.slane %v1052_v10, 1  ;;  %v528_v15 = vperm.slane %v1054_v11, 1 }
  0xae   : > { %v550_v23 = vperm.slane %v1052_v10, 2  ;;  %v551_v24 = vperm.slane %v1054_v11, 2  ;;  %v573_v31 = vperm.slane %v1052_v10, 3  ;;  %v574_v32 = vperm.slane %v1054_v11, 3 }
  0xaf   : > { %v522_v18 = vmul.f32 %v518_v2, %v508_v14  ;;  %v523_v19 = vmul.f32 %v518_v2, %v509_v12  ;;  %v541_v21 = vmul.f32 %v537_v54, %v527_v13  ;;  %v542_v22 = vmul.f32 %v537_v54, %v528_v15 }
  0xb0   : > { %v520_v25 = vmul.f32 %v1050_v20, %v508_v14  ;;  %v521_v26 = vmul.f32 %v1050_v20, %v509_v12  ;;  %v539_v27 = vmul.f32 %v532_v0, %v527_v13  ;;  %v540_v28 = vmul.f32 %v532_v0, %v528_v15 }
  0xb1   : > { %v560_v8 = vpop.permute.xlu1 %559  ;;  %v555_v9 = vpop.permute.xlu0 %554  ;;  %v545_v36 = vadd.f32 %v541_v21, %v522_v18  ;;  %v546_v37 = vadd.f32 %v542_v22, %v523_v19  ;;  %v596_v20 = vperm.slane %v1052_v10, 4  ;;  %v597_v45 = vperm.slane %v1054_v11, 4 }
  0xb2   : > { %v564_v29 = vmul.f32 %v560_v8, %v550_v23  ;;  %v565_v30 = vmul.f32 %v560_v8, %v551_v24  ;;  %v562_v33 = vmul.f32 %v555_v9, %v550_v23  ;;  %v563_v35 = vmul.f32 %v555_v9, %v551_v24  ;;  %v675_v22 = vpop.permute.xlu2 %674 }
  0xb3   : > { %v543_v41 = vadd.f32 %v539_v27, %v520_v25  ;;  %v544_v43 = vadd.f32 %v540_v28, %v521_v26  ;;  %v619_v52 = vperm.slane %v1052_v10, 5  ;;  %v620_v53 = vperm.slane %v1054_v11, 5 }
  0xb4   : > { %v568_v34 = vadd.f32 %v564_v29, %v545_v36  ;;  %v569_v44 = vadd.f32 %v565_v30, %v546_v37  ;;  %v585_v54 = vmul.f32 %v578_v5, %v573_v31  ;;  %v586_v55 = vmul.f32 %v578_v5, %v574_v32 }
  0xb5   : > { %v566_v48 = vadd.f32 %v562_v33, %v543_v41  ;;  %v567_v49 = vadd.f32 %v563_v35, %v544_v43  ;;  %v610_v58 = vmul.f32 %v606_v1, %v596_v20  ;;  %v611_v42 = vmul.f32 %v606_v1, %v597_v45 }
  0xb6   : > { %v642_v2 = vperm.slane %v1052_v10, 6  ;;  %v643_v3 = vperm.slane %v1054_v11, 6  ;;  %v665_v5 = vperm.slane %v1052_v10, 7  ;;  %v666_v9 = vperm.slane %v1054_v11, 7 }
  0xb7   : > { %v589_v61 = vadd.f32 %v585_v54, %v566_v48  ;;  %v590_v62 = vadd.f32 %v586_v55, %v567_v49 }
  0xb8   : > { %v654_v19 = vmul.f32 %v647_v40, %v642_v2  ;;  %v655_v21 = vmul.f32 %v647_v40, %v643_v3  ;;  %v679_v27 = vmul.f32 %v675_v22, %v665_v5  ;;  %v680_v10 = vmul.f32 %v675_v22, %v666_v9 }
  0xb9   : > { %v601_v16 = vpop.permute.xlu1 %600  ;;  %v583_v17 = vpop.permute.xlu0 %582 }
  0xba   : > { %v587_v38 = vmul.f32 %v583_v17, %v573_v31  ;;  %v588_v39 = vmul.f32 %v583_v17, %v574_v32  ;;  %v608_v56 = vmul.f32 %v601_v16, %v596_v20  ;;  %v609_v57 = vmul.f32 %v601_v16, %v597_v45 }
  0xbc   : > { %v591_v50 = vadd.f32 %v587_v38, %v568_v34  ;;  %v592_v51 = vadd.f32 %v588_v39, %v569_v44  ;;  %v612_v7 = vadd.f32 %v608_v56, %v589_v61  ;;  %v613_v8 = vadd.f32 %v609_v57, %v590_v62 }
  0xbe   : > { %v614_v4 = vadd.f32 %v610_v58, %v591_v50  ;;  %v615_v6 = vadd.f32 %v611_v42, %v592_v51 }
  0xc1   : > { %v629_v46 = vpop.permute.xlu1 %628  ;;  %v624_v47 = vpop.permute.xlu0 %623 }
  0xc2   : > { %v633_v59 = vmul.f32 %v629_v46, %v619_v52  ;;  %v634_v60 = vmul.f32 %v629_v46, %v620_v53  ;;  %v631_v63 = vmul.f32 %v624_v47, %v619_v52  ;;  %v632_v0 = vmul.f32 %v624_v47, %v620_v53 }
  0xc4   : > { %v637_v14 = vadd.f32 %v633_v59, %v614_v4  ;;  %v638_v1 = vadd.f32 %v634_v60, %v615_v6  ;;  %v635_v15 = vadd.f32 %v631_v63, %v612_v7  ;;  %v636_v16 = vadd.f32 %v632_v0, %v613_v8 }
  0xc6   : > { %v658_v28 = vadd.f32 %v654_v19, %v635_v15  ;;  %v659_v11 = vadd.f32 %v655_v21, %v636_v16 }
  0xc9   : > { %v670_v12 = vpop.permute.xlu1 %669  ;;  %v652_v13 = vpop.permute.xlu0 %651 }
  0xca   : > { %v656_v17 = vmul.f32 %v652_v13, %v642_v2  ;;  %v657_v18 = vmul.f32 %v652_v13, %v643_v3  ;;  %v677_v23 = vmul.f32 %v670_v12, %v665_v5  ;;  %v678_v24 = vmul.f32 %v670_v12, %v666_v9 }
  0xcc   : > { %v660_v25 = vadd.f32 %v656_v17, %v637_v14  ;;  %v661_v26 = vadd.f32 %v657_v18, %v638_v1  ;;  %v681_v31 = vadd.f32 %v677_v23, %v658_v28  ;;  %v682_v32 = vadd.f32 %v678_v24, %v659_v11 }
  0xce   : > { %v683_v29 = vadd.f32 %v679_v27, %v660_v25  ;;  %v684_v30 = vadd.f32 %v680_v10, %v661_v26 }
  0xd1   : > { %v695_v33 = vpop.permute.xlu1 %694  ;;  %v690_v35 = vpop.permute.xlu0 %689 }
  0xd2   : > { %v699_v36 = vadd.f32 %v695_v33, %v683_v29  ;;  %v700_v37 = vadd.f32 %v695_v33, %v684_v30  ;;  %v697_v38 = vadd.f32 %v690_v35, %v681_v31  ;;  %v698_v39 = vadd.f32 %v690_v35, %v682_v32 }
  0xd4   : > { %v703_v40 = vmax.f32 %v699_v36, 0.0  ;;  %v704_v41 = vmax.f32 %v700_v37, 0.0  ;;  %v701_v43 = vmax.f32 %v697_v38, 0.0  ;;  %v702_v34 = vmax.f32 %v698_v39, 0.0 }
  0xd6   : > { %707 = vst [vmem:[%s316_s19 + $0x10] sm:$0xff] %v703_v40 }
  0xd7   : > { %708 = vst [vmem:[%s316_s19 + $0x18] sm:$0xff] %v704_v41 }
  0xd8   : > { %705 = vst [vmem:[%s316_s19] sm:$0xff] %v701_v43 }
  0xd9   : > { %706 = vst [vmem:[%s316_s19 + $0x8] sm:$0xff] %v702_v34 }
  0xda PF: > { %s17_s26 = sadd.s32 1, %s883_s26   ;;  %s1095_s24 = smov %s879_s25 }
  0xdb   : > { %p14_p5 = scmp.ge.s32.totalorder %s17_s26, 4   ;;  %s1096_s25 = smov %s1098_s27 }
  0xdd   :  { %16 = sbr.rel (!%p14_p5) target bundleno = 2 (0x2), region = 95 }

</bundles_post_ra>
